<compile_context>
chip_gen: v7x
topology: tpu7x:2x2x1
jax: 0.10.0
libtpu: 0.0.40
codegen_flags: <defaults>
</compile_context>

<pallas_src>
import math

import jax
import jax.numpy as jnp
from jax import lax
from jax.experimental import pallas as pl
from jax.experimental.pallas import tpu as pltpu


def _pos_emb_kernel(x_ref, o_ref, pe_ref):
    # x_ref / o_ref view: (1, TS, D) — one sequence tile of one batch element.
    _, TS, D = x_ref.shape
    half = D // 2

    # Program ids are read at the top level of the kernel (NOT inside pl.when).
    si = pl.program_id(0)   # sequence-tile index
    b = pl.program_id(1)    # batch index (innermost grid axis)

    # Recompute the PE tile only at b == 0; for b = 1..B-1 the cached scratch
    # is reused.  This is only valid because the batch axis is the INNERMOST
    # grid axis and is marked "arbitrary" (sequential per core) — do not
    # reorder the grid or mark the batch axis "parallel".
    @pl.when(b == 0)
    def _compute_pe():
        # Positions for this tile: si*TS + [0, TS), as a (1, TS, 1) column.
        row = lax.broadcasted_iota(jnp.int32, (1, TS, 1), 1).astype(jnp.float32)
        pos = row + (si * TS).astype(jnp.float32)
        # freq_j = 1 / 10000^(2j/D) = exp(-2j*ln(1e4)/D) over D/2 columns.
        col = lax.broadcasted_iota(jnp.int32, (1, 1, half), 2).astype(jnp.float32)
        freq = jnp.exp(col * jnp.float32(-2.0 * math.log(10000.0) / D))
        ang = pos * freq                                   # (1, TS, half)
        # Two direct half-writes — no full-width concatenated temporary.
        pe_ref[:, :, :half] = jnp.cos(ang)
        pe_ref[:, :, half:] = jnp.sin(ang)

    # Steady state (b > 0): pure load-add-store, HBM-bandwidth bound.
    o_ref[...] = (pe_ref[...] + x_ref[...].astype(jnp.float32)).astype(o_ref.dtype)


def _pick_seq_tile(S, D, in_itemsize, out_itemsize, vmem_budget_bytes=32 << 20):
    """Pick the sequence-tile height (rows per block).

    Per-grid-step VMEM = 2 double-buffered in blocks + 2 double-buffered out
    blocks + 1 f32 pe scratch = ts*D*(2*in + 2*out + 4) bytes.  Row granularity
    is dtype aware (sublane packing: 8 f32 / 16 bf16 / 32 int8-fp8).  We prefer
    the largest power-of-two tile that fits the budget while leaving at least
    two sequence tiles so megacore (v7x) has something to shard.
    """
    min_rows = max(8, 32 // max(1, in_itemsize))
    if S <= min_rows:
        return S  # one full-sequence block (block dim == array dim → legal)
    bytes_per_row = D * (2 * in_itemsize + 2 * out_itemsize + 4)
    max_rows = max(min_rows, vmem_budget_bytes // bytes_per_row)
    ts = min_rows
    while ts * 2 <= max_rows and ts * 4 <= S:
        ts *= 2
    return ts


def positional_embedding_sum(x):
    """x: (B, S, D) array -> positional_embedding + x (dropout = identity)."""
    B, S, D = x.shape
    assert D % 2 == 0, "hidden size must be even"
    in_item = jnp.dtype(x.dtype).itemsize
    out_item = in_item
    ts = _pick_seq_tile(S, D, in_item, out_item)
    n_s = pl.cdiv(S, ts)   # masked tail tile when ts does not divide S

    # Scoped-VMEM limit sized to the real working set (with headroom), clamped
    # so it is valid on v5e (16 MiB default) through v7x (64 MiB physical).
    vmem_need = ts * D * (2 * in_item + 2 * out_item + 4)
    vmem_limit = int(min(48 << 20, max(16 << 20, vmem_need + (4 << 20))))

    return pl.pallas_call(
        _pos_emb_kernel,
        out_shape=jax.ShapeDtypeStruct((B, S, D), x.dtype),
        grid_spec=pltpu.PrefetchScalarGridSpec(
            num_scalar_prefetch=0,
            # B is innermost so the cached PE tile is reused across the batch;
            # the sequence-tile axis is 'parallel' so megacore (v7x) shards it.
            grid=(n_s, B),
            in_specs=[pl.BlockSpec((1, ts, D), lambda si, b: (b, si, 0))],
            out_specs=pl.BlockSpec((1, ts, D), lambda si, b: (b, si, 0)),
            scratch_shapes=[pltpu.VMEM((1, ts, D), jnp.float32)],
        ),
        compiler_params=pltpu.CompilerParams(
            dimension_semantics=("parallel", "arbitrary"),
            vmem_limit_bytes=vmem_limit,
        ),
    )(x)


def _reference(x):
    B, S, D = x.shape
    half = D // 2
    j = jnp.arange(half, dtype=jnp.float32)
    freq = 1.0 / jnp.power(10000.0, 2.0 * j / D)            # (D/2,)
    pos = jnp.arange(S, dtype=jnp.float32)[None, :, None]   # (1, S, 1)
    ang = pos * freq[None, None, :]                         # (1, S, D/2)
    pe = jnp.concatenate([jnp.cos(ang), jnp.sin(ang)], axis=2)  # (1, S, D)
    return (pe + x.astype(jnp.float32)).astype(x.dtype)


if __name__ == "__main__":
    key = jax.random.PRNGKey(0)
    # (batch, seq, hidden) shapes implied by the module's forward.
    for (B, S, D) in [(2, 8, 32), (3, 40, 64)]:
        k, key = jax.random.split(key)
        x = jax.random.normal(k, (B, S, D), dtype=jnp.float32)

        out = jax.block_until_ready(positional_embedding_sum(x))
        ref = _reference(x)

        assert out.shape == (B, S, D), f"bad shape at {(B, S, D)}"
        assert out.dtype == x.dtype, f"bad dtype at {(B, S, D)}"
        assert jnp.allclose(out, ref, atol=1e-4, rtol=1e-4), f"mismatch at {(B, S, D)}"

    print("KERNEL_OK")
</pallas_src>

<mosaic_0001>
module attributes {stable_mosaic.version = 11 : i64} {
  func.func @_pos_emb_kernel(%arg0: i32, %arg1: i32, %arg2: memref<1x8x32xf32, #tpu.memory_space<vmem>>, %arg3: memref<1x8x32xf32, #tpu.memory_space<vmem>>, %arg4: memref<1x8x32xf32, #tpu.memory_space<vmem>>) attributes {dimension_semantics = [#tpu.dimension_semantics<parallel>, #tpu.dimension_semantics<arbitrary>], iteration_bounds = array<i64: 1, 2>, scalar_prefetch = 0 : i64, scratch_operands = 1 : i64, tpu.core_type = #tpu.core_type<tc>, window_params = [{transform_indices = @transform_0, window_bounds = array<i64: 1, 8, 32>}, {transform_indices = @transform_1, window_bounds = array<i64: 1, 8, 32>}]} {
    %c0_i32 = arith.constant 0 : i32
    %0 = arith.cmpi eq, %arg1, %c0_i32 : i32
    %1 = arith.extui %0 : i1 to i32
    %c0_i32_0 = arith.constant 0 : i32
    %2 = arith.cmpi ne, %1, %c0_i32_0 : i32
    scf.if %2 {
      %7 = tpu.iota {dimensions = array<i32: 1>} : vector<1x8x1xi32>
      %8 = arith.sitofp %7 : vector<1x8x1xi32> to vector<1x8x1xf32>
      %c8_i32 = arith.constant 8 : i32
      %9 = arith.muli %arg0, %c8_i32 : i32
      %10 = arith.sitofp %9 : i32 to f32
      %11 = vector.broadcast %10 : f32 to vector<1x8x1xf32>
      %12 = arith.addf %8, %11 : vector<1x8x1xf32>
      %13 = tpu.iota {dimensions = array<i32: 2>} : vector<1x1x16xi32>
      %14 = arith.sitofp %13 : vector<1x1x16xi32> to vector<1x1x16xf32>
      %cst = arith.constant -0.575646281 : f32
      %15 = vector.broadcast %cst : f32 to vector<1x1x16xf32>
      %16 = arith.mulf %14, %15 : vector<1x1x16xf32>
      %17 = math.exp %16 : vector<1x1x16xf32>
      %18 = vector.broadcast %12 : vector<1x8x1xf32> to vector<1x8x16xf32>
      %19 = vector.broadcast %17 : vector<1x1x16xf32> to vector<1x8x16xf32>
      %20 = arith.mulf %18, %19 : vector<1x8x16xf32>
      %21 = math.cos %20 : vector<1x8x16xf32>
      %c0_9 = arith.constant 0 : index
      %c0_10 = arith.constant 0 : index
      %c0_11 = arith.constant 0 : index
      %22 = vector.load %arg4[%c0_9, %c0_10, %c0_11] : memref<1x8x32xf32, #tpu.memory_space<vmem>>, vector<1x8x16xf32>
      tpu.vector_store %arg4[%c0_9, %c0_10, %c0_11], %21 {strides = array<i32>} : memref<1x8x32xf32, #tpu.memory_space<vmem>>, vector<1x8x16xf32>,
      %23 = math.sin %20 : vector<1x8x16xf32>
      %c0_12 = arith.constant 0 : index
      %c0_13 = arith.constant 0 : index
      %c16 = arith.constant 16 : index
      %24 = vector.load %arg4[%c0_12, %c0_13, %c16] : memref<1x8x32xf32, #tpu.memory_space<vmem>>, vector<1x8x16xf32>
      tpu.vector_store %arg4[%c0_12, %c0_13, %c16], %23 {strides = array<i32>} : memref<1x8x32xf32, #tpu.memory_space<vmem>>, vector<1x8x16xf32>,
    } else {
    }
    %c0 = arith.constant 0 : index
    %c0_1 = arith.constant 0 : index
    %c0_2 = arith.constant 0 : index
    %3 = vector.load %arg4[%c0, %c0_1, %c0_2] : memref<1x8x32xf32, #tpu.memory_space<vmem>>, vector<1x8x32xf32>
    %c0_3 = arith.constant 0 : index
    %c0_4 = arith.constant 0 : index
    %c0_5 = arith.constant 0 : index
    %4 = vector.load %arg2[%c0_3, %c0_4, %c0_5] : memref<1x8x32xf32, #tpu.memory_space<vmem>>, vector<1x8x32xf32>
    %5 = arith.addf %3, %4 : vector<1x8x32xf32>
    %c0_6 = arith.constant 0 : index
    %c0_7 = arith.constant 0 : index
    %c0_8 = arith.constant 0 : index
    %6 = vector.load %arg3[%c0_6, %c0_7, %c0_8] : memref<1x8x32xf32, #tpu.memory_space<vmem>>, vector<1x8x32xf32>
    tpu.vector_store %arg3[%c0_6, %c0_7, %c0_8], %5 {strides = array<i32>} : memref<1x8x32xf32, #tpu.memory_space<vmem>>, vector<1x8x32xf32>,
    return
  }
  func.func @transform_0(%arg0: i32, %arg1: i32) -> (i32, i32, i32) {
    %c0_i32 = arith.constant 0 : i32
    %c0_i32_0 = arith.constant 0 : i32
    return %arg1, %arg0, %c0_i32 : i32, i32, i32
  }
  func.func @transform_1(%arg0: i32, %arg1: i32) -> (i32, i32, i32) {
    %c0_i32 = arith.constant 0 : i32
    %c0_i32_0 = arith.constant 0 : i32
    return %arg1, %arg0, %c0_i32 : i32, i32, i32
  }
}

</mosaic_0001>

<bundles_post_ra>
// kernel: tpu_custom_call.1
= control target key start
LH: loop header
LB: loop body
LE: loop exit
PB: predicated region body
PF: predicated region fallthrough
CT: control target
= control target key end

     0   :  { %6 = vsyncpa [#allocation4], 0  ;;  %s917_s0 = inlined_call_operand.hbm [shape: f32[2,8,32], index: 0, kind: input, shape index: {}]   ;;  %s918_s1 = inlined_call_operand.hbm [shape: f32[2,8,32], index: 1, kind: output, shape index: {}]  }
   0x1   :  { %8 = vsyncpa [#allocation4 + $0x1], 0 }
   0x2   :  { %9 = vsyncpa [#allocation5], 0 }
   0x3   :  { %11 = vsyncpa [#allocation5 + $0x1], 0  ;;  %s716_s6 = smov 0   ;;  %s718_s7 = smov 0  }
   0x4   :  { %s720_s8 = smov 0   ;;  %s722_s9 = smov 0  }
   0x5   :  { %s724_s10 = smov 0   ;;  %s726_s11 = smov 0  }
   0x6 LB: > { %s482_s12 = sadd.s32 4294967295, %s695_s11   ;;  %s483_s13 = sadd.s32 4294967294, %s695_s11   ;;  %s695_s11 = sphi %s726_s11, %s17_s11   ;;  %s691_s10 = sphi %s724_s10, %s934_s10   ;;  %s687_s9 = sphi %s722_s9, %s933_s9   ;;  %s683_s8 = sphi %s720_s8, %s932_s8   ;;  %s679_s7 = sphi %s718_s7, %s931_s7   ;;  %s675_s6 = sphi %s716_s6, %s930_s6  }
   0x7   : > { %s26_s14 = sadd.s32 1, %s691_s10  ;;  %s38_s15 = sadd.s32 1, %s683_s8 }
   0x8   : > { %p27_p0 = scmp.ge.s32.totalorder %s26_s14, 2  ;;  %p45_p1 = scmp.ne.s32.totalorder %s683_s8, %s679_s7 }
   0x9   : > { %p46_p2 = scmp.eq.s32.totalorder %s695_s11, 0  ;;  %p51_p3 = scmp.ne.s32.totalorder %s679_s7, %s675_s6 }
   0xa   : > { %s936_s14 = smov (%p27_p0, %s26_s14), 0  ;;  %p52_p5 = scmp.eq.s32.totalorder %s482_s12, 0 }
   0xb   : > { %p757_p4 = por %p46_p2, %p45_p1  ;;  %s33_s17 = ssub.s32 %s691_s10, %s936_s14 }
   0xc   : > { %p77_p6 = scmp.eq.s32.totalorder %s482_s12, 1  ;;  %p36_p7 = scmp.eq.s32.totalorder %s33_s17, 0 }
   0xd   : > { %p763_p8 = por %p52_p5, %p51_p3  ;;  %p83_p10 = scmp.eq.s32.totalorder %s483_s13, 1 }
   0xe   : > { %p767_p9 = por %p77_p6, %p45_p1  ;;  %p520_p13 = scmp.lt.s32.totalorder %s695_s11, 2 }
   0xf   : > { %s772_s20 = scalar_select %p36_p7, %s683_s8, %s38_s15  }
  0x10   : > { %s922_s19 = scalar_select %p767_p9, 1, 0 }
  0x11   : > { %p774_p11 = por %p83_p10, %p51_p3  ;;  %s103_s22 = sand.u32 1, %s683_s8  }
  0x12   : > { %s486_s23 = sshll.u32 %s103_s22, 3  ;;  %s487_s24 = sshll.u32 %s691_s10, 7 }
  0x13   : > { %s923_s21 = scalar_select %p774_p11, 1, 0 }
  0x14   : > { %s785_s27 = scalar_lea.hbm %s917_s0, %s487_s24  ;;  %s107_s28 = scalar_lea.vmem [#allocation3], %s486_s23 }
  0x15   : > { %s115_s29 = sshll.u32 %s107_s28, 4  ;;  %p791_p0 = pnand %p520_p13, %p757_p4  ;;  %s787_s29 = int_to_ptr.vmem [resolvable:$true] %s115_s29 }
  0x16   : > { %s104_s2 = scalar_lea.sflag [#allocation4], %s103_s22  ;;  %s583_s3 = scalar_lea.hbm %s785_s27, 128 }
  0x17   : > { %p584_p3 = scmp.ne.s32.totalorder %s785_s27, %s583_s3  ;;  %p585_p5 = pneg %p791_p0 }
  0x18   : > { %s588_s12 = scalar_lea.hbm %s917_s0, 256  ;;  %p589_p4 = scmp.lt.u32.totalorder %s785_s27, %s917_s0 }
  0x19   : > { %p586_p6 = pnand %p585_p5, %p584_p3  ;;  %p590_p10 = scmp.lt.u32.totalorder %s588_s12, %s583_s3 }
  0x1a   : > { %p592_p12 = scmp.lt.u32.totalorder %s583_s3, %s785_s27 }
  0x1b   : > { %p587_p7 = pneg %p586_p6  ;;  %p591_p13 = por %p590_p10, %p589_p4 }
  0x1d   : > { %p593_p1 = por %p592_p12, %p591_p13 }
  0x1f   : > { %p594_p2 = pnand %p593_p1, %p587_p7 }
  0x21   : > { %597 = shalt.err (!%p594_p2)
}
  0x22   : > { %s598_s16 = scalar_lea.vmem %s787_s29, 128  ;;  %s697_s17 = smov [#allocation3]  }
  0x23   : > { %p599_p3 = scmp.ne.s32.totalorder %s787_s29, %s598_s16  ;;  %s603_s22 = sshll.u32 %s697_s17, 4  ;;  %s604_s22 = int_to_ptr.vmem [resolvable:$false] %s603_s22 }
  0x24   : > { %s605_s23 = scalar_lea.vmem %s604_s22, 256  ;;  %p606_p9 = scmp.lt.s32.totalorder %s787_s29, %s604_s22 }
  0x25   : > { %p601_p6 = pnand %p599_p3, %p585_p5  ;;  %p607_p4 = scmp.lt.s32.totalorder %s605_s23, %s598_s16 }
  0x27   : > { %p602_p11 = pneg %p601_p6  ;;  %p608_p10 = por %p607_p4, %p606_p9 }
  0x29   : > { %p609_p12 = pnand %p608_p10, %p602_p11 }
  0x2b   : > { %612 = shalt.err (!%p609_p12)
}
  0x2c   : > { %515 = dma.hbm_to_vmem [thread:$0]  (!%p791_p0), %s785_s27, 128, %s787_s29, %s104_s2  }
  0x2d   : > { %p925_p1 = scmp.lt.s32.totalorder %s695_s11, 3  ;;  %p926_p2 = scmp.ge.s32.totalorder %s695_s11, 1 }
  0x2f   : > { %p121_p5 = pnand %p926_p2, %p925_p1 }
  0x30   : > { %s827_s24 = sand.u32 (!%p121_p5), 1, %s679_s7  }
  0x31   : > { %124 = sbr.rel (%p121_p5) target bundleno = 302 (0x12e), region = 24  ;;  %s489_s25 = sshll.u32 (!%p121_p5), %s827_s24, 3 }
  0x32   : > { %s127_s26 = scalar_lea.sflag (!%p121_p5), [#allocation4], %s827_s24  ;;  %s831_s28 = scalar_lea.vmem (!%p121_p5), [#allocation3], %s489_s25 }
  0x38   : > { %666 = dma.done.wait (%p763_p8), %s127_s26, 128  }
  0x39   : > { %668 = vsyncadd (%p763_p8), %s127_s26, 4294967168  ;;  %s837_s27 = scalar_lea.vmem [#allocation6], %s489_s25  ;;  %p491_p9 = scmp.ne.s32.totalorder %s687_s9, 0 }
  0x3a   : > { %v153_v0 = vlaneseq (!%p491_p9)  ;;  %v698_v20 = vmov (!%p491_p9), 683565275   ;;  %v699_v22 = vmov (!%p491_p9), 2475754826   ;;  %v700_v24 = vmov (!%p491_p9), 2131351028  }
  0x3b   : > { %152 = sbr.rel (%p491_p9) target bundleno = 277 (0x115), region = 32  ;;  %v701_v26 = vmov (!%p491_p9), 2102212464   ;;  %v702_v28 = vmov (!%p491_p9), 920167782   ;;  %s704_s18 = smov (!%p491_p9), 16  }
  0x3c   : > { %v161_v1 = vand.u32 (!%p491_p9), 127, %v153_v0  ;;  %v154_v5 = vshrl.u32 (!%p491_p9), %v153_v0, 7  ;;  %v703_v35 = vmov (!%p491_p9), 1326507024  }
  0x3e   : > { %v162_v2 = vcvt.s32.f32 (!%p491_p9), %v161_v1  ;;  %v155_v6 = vcvt.s32.f32 (!%p491_p9), %v154_v5 }
  0x40   : > { %v163_v3 = vmul.f32 (!%p491_p9), -0.5756463, %v162_v2 }
  0x42   : > { %v164_v4 = vmul.f32 1.442695, %v163_v3 }
  0x44   : > { %577 = vpow2.f32 %v164_v4 }
  0x4e   : > { %v578_v7 = vpop.eup %577 }
  0x4f   : > { %v840_v8 = vmul.f32 %v578_v7, %v155_v6 }
  0x51   : > { %v170_v9 = vand.u32 2139095040, %v840_v8  ;;  %v167_v11 = vand.u32 2147483647, %v840_v8  ;;  %vm169_vm7 = vcmp.lt.s32.totalorder %v840_v8, 0  ;;  %vm259_vm15 = vweird.f32 %v840_v8 }
  0x53   : > { %v171_v10 = vshrl.u32 %v170_v9, 23  ;;  %v174_v14 = vand.u32 8388607, %v167_v11  ;;  %vm168_vm8 = vcmp.le.f32.partialorder %v167_v11, 0.7853982 }
  0x55   : > { %v492_v12 = vadd.s32 4294967169, %v171_v10  ;;  %v175_v17 = vor.u32 8388608, %v174_v14 }
  0x57   : > { %v177_v13 = vadd.s32 1, %v492_v12  ;;  %v215_v37 = vshll.u32 %v175_v17, 8 }
  0x59   : > { %vm178_vm0 = vcmp.gt.s32.totalorder %v177_v13, 0 }
  0x5a   : > { %v179_v15 = vsel %vm178_vm0, %v177_v13, 0  ;;  %vm270_vm0 = vcmask 130048  }
  0x5b   : > { %v181_v16 = vand.u32 31, %v179_v15  ;;  %v180_v18 = vshrl.u32 %v179_v15, 5 }
  0x5d   : > { %v182_v19 = vsub.s32 32, %v181_v16  ;;  %v184_v21 = vshll.u32 %v698_v20, %v181_v16  ;;  %v187_v23 = vshll.u32 %v699_v22, %v181_v16  ;;  %v190_v25 = vshll.u32 %v700_v24, %v181_v16 }
  0x5e   : > { %v193_v27 = vshll.u32 %v701_v26, %v181_v16  ;;  %v196_v29 = vshll.u32 %v702_v28, %v181_v16  ;;  %vm199_vm1 = vcmp.lt.s32.totalorder %v180_v18, 1  ;;  %vm202_vm2 = vcmp.lt.s32.totalorder %v180_v18, 4 }
  0x5f   : > { %v183_v30 = vshrl.u32 %v698_v20, %v182_v19  ;;  %v185_v31 = vshrl.u32 %v699_v22, %v182_v19  ;;  %v188_v32 = vshrl.u32 %v700_v24, %v182_v19  ;;  %v191_v33 = vshrl.u32 %v701_v26, %v182_v19 }
  0x60   : > { %v194_v34 = vshrl.u32 %v702_v28, %v182_v19  ;;  %v197_v36 = vshrl.u32 %v703_v35, %v182_v19  ;;  %vm200_vm3 = vcmp.lt.s32.totalorder %v180_v18, 2  ;;  %vm201_vm4 = vcmp.lt.s32.totalorder %v180_v18, 3 }
  0x61   : > { %v186_v38 = vor.u32 %v185_v31, %v184_v21  ;;  %v189_v39 = vor.u32 %v188_v32, %v187_v23  ;;  %v192_v40 = vor.u32 %v191_v33, %v190_v25 }
  0x62   : > { %v195_v41 = vor.u32 %v194_v34, %v193_v27  ;;  %v198_v42 = vor.u32 %v197_v36, %v196_v29 }
  0x63   : > { %v203_v43 = vsel %vm199_vm1, %v183_v30, %v186_v38  ;;  %v204_v44 = vsel %vm202_vm2, %v192_v40, 2102212464  ;;  %v207_v45 = vsel %vm199_vm1, %v186_v38, %v189_v39  ;;  %v211_v46 = vsel %vm199_vm1, %v189_v39, %v192_v40 }
  0x64   : > { %v205_v47 = vsel %vm201_vm4, %v189_v39, %v204_v44  ;;  %v208_v48 = vsel %vm202_vm2, %v195_v41, 920167782  ;;  %v212_v49 = vsel %vm202_vm2, %v198_v42, 1326507024  ;;  %vm380_vm1 = vcmask 261248  }
  0x65   : > { %v209_v50 = vsel %vm201_vm4, %v192_v40, %v208_v48  ;;  %v213_v51 = vsel %vm201_vm4, %v195_v41, %v212_v49  ;;  %v206_v52 = vsel %vm200_vm3, %v203_v43, %v205_v47 }
  0x66   : > { %v210_v53 = vsel %vm200_vm3, %v207_v45, %v209_v50  ;;  %v214_v54 = vsel %vm200_vm3, %v211_v46, %v213_v51  ;;  %v222_v59 = vmul.u32 %v215_v37, %v206_v52 }
  0x67   : > { %v846_v55 = vmul.u32.u64.low %v215_v37, %v214_v54  ;;  %v847_v56 = vmul.u32.u64.high %v215_v37, %v214_v54, %v846_v55  ;;  %v849_v57 = vmul.u32.u64.low %v215_v37, %v210_v53  ;;  %v850_v58 = vmul.u32.u64.high %v215_v37, %v210_v53, %v849_v57 }
  0x69   : > { %vm224_vm5 = vc.u32 %v847_v56, %v849_v57  ;;  %v225_v60 = vadd.s32 1, %v850_v58  ;;  %v223_v7 = vadd.s32 %v849_v57, %v847_v56 }
  0x6b   : > { %v226_v61 = vsel %vm224_vm5, %v225_v60, %v850_v58 }
  0x6c   : > { %v227_v62 = vadd.s32 %v226_v61, %v222_v59 }
  0x6e   : > { %v228_v63 = vadd.s32 536870912, %v227_v62 }
  0x70   : > { %v229_v0 = vshrl.u32 %v228_v63, 30 }
  0x72   : > { %v230_v1 = vshll.u32 %v229_v0, 30  ;;  %v253_v21 = vsub.s32 4, %v229_v0 }
  0x74   : > { %v231_v2 = vsub.s32 %v227_v62, %v230_v1  ;;  %v254_v24 = vsel %vm169_vm7, %v253_v21, %v229_v0 }
  0x75   : > { %v256_v27 = vsel %vm168_vm8, 0, %v254_v24 }
  0x76   : > { %v233_v3 = vsub.s32 0, %v231_v2  ;;  %v365_v28 = vadd.s32 3, %v256_v27  ;;  %v260_v29 = vand.u32 3, %v256_v27 }
  0x78   : > { %v493_v4 = vmin.u32 %v233_v3, %v231_v2  ;;  %v366_v30 = vand.u32 3, %v365_v28  ;;  %vm265_vm9 = vcmp.eq.s32.totalorder %v260_v29, 2  ;;  %vm262_vm11 = vcmp.eq.s32.totalorder %v260_v29, 0 }
  0x79   : > { %vm261_vm13 = vcmp.lt.s32.totalorder %v260_v29, 2 }
  0x7a   : > { %v235_v5 = vclz %v493_v4  ;;  %vm371_vm10 = vcmp.eq.s32.totalorder %v366_v30, 2  ;;  %vm368_vm12 = vcmp.eq.s32.totalorder %v366_v30, 0  ;;  %vm367_vm14 = vcmp.lt.s32.totalorder %v366_v30, 2 }
  0x7c   : > { %v494_v6 = vadd.s32 4294967294, %v235_v5 }
  0x7e   : > { %vm495_vm6 = vcmp.lt.s32.totalorder %v494_v6, 0 }
  0x7f   : > { %v238_v9 = vsel %vm495_vm6, 0, %v494_v6 }
  0x80   : > { %v239_v10 = vsub.s32 32, %v238_v9  ;;  %v240_v12 = vshll.u32 %v231_v2, %v238_v9  ;;  %v243_v13 = vsub.s32 4294967266, %v238_v9 }
  0x82   : > { %v241_v14 = vshrl.u32 %v223_v7, %v239_v10  ;;  %v244_v15 = vadd.s32 127, %v243_v13 }
  0x84   : > { %v242_v16 = vor.u32 %v241_v14, %v240_v12  ;;  %v245_v17 = vshll.u32 %v244_v15, 23 }
  0x86   : > { %v246_v18 = vor.u32 4788187, %v245_v17  ;;  %v249_v19 = vcvt.s32.f32 %v242_v16 }
  0x88   : > { %v247_v20 = vand.u32 2147483647, %v246_v18 }
  0x8a   : > { %v250_v22 = vmul.f32 %v249_v19, %v247_v20 }
  0x8c   : > { %v251_v23 = vxor.u32 2147483648, %v250_v22 }
  0x8e   : > { %v252_v25 = vsel %vm169_vm7, %v251_v23, %v250_v22 }
  0x8f   : > { %v255_v26 = vsel %vm168_vm8, %v840_v8, %v252_v25 }
  0x90   : > { %579 = vcosq.f32 %v255_v26 }
  0x91   : > { %581 = vsinq.f32 %v255_v26 }
  0x9a   : > { %v580_v31 = vpop.eup %579 }
  0x9b   : > { %v582_v32 = vpop.eup %581  ;;  %v266_v33 = vxor.u32 2147483648, %v580_v31 }
  0x9c   : > { %v263_v11 = vxor.u32 2147483648, %v582_v32 }
  0x9d   : > { %v267_v34 = vsel %vm265_vm9, %v266_v33, %v582_v32  ;;  %v373_v35 = vsel %vm371_vm10, %v266_v33, %v582_v32 }
  0x9e   : > { %v264_v36 = vsel %vm262_vm11, %v580_v31, %v263_v11  ;;  %v370_v37 = vsel %vm368_vm12, %v580_v31, %v263_v11 }
  0x9f   : > { %v268_v38 = vsel %vm261_vm13, %v264_v36, %v267_v34  ;;  %v374_v39 = vsel %vm367_vm14, %v370_v37, %v373_v35 }
  0xa0   : > { %v269_v40 = vsel %vm259_vm15, nan, %v268_v38  ;;  %v375_v41 = vsel %vm259_vm15, nan, %v374_v39 }
  0xa1   : > { %271 = vst.msk [vmem:[#allocation2] sm:$0xff] %vm270_vm0, %v269_v40  ;;  %377 = vrot.lane.b32.xlu0 %v375_v41, %s704_s18 }
 0x113   : > { %v378_v42 = vpop.permute.xlu0 %377 }
 0x114   : > { %381 = vst.msk [vmem:[#allocation2] sm:$0xff] %vm380_vm1, %v378_v42 }
 0x115 PF: > { %v383_v8 = vld [vmem:[%s831_s28] sm:$0xff]  ;;  %vm385_vm2 = vcmask 261120   ;;  %s501_s29 = sshll.u32 %s687_s9, 7  ;;  %s402_s4 = sshll.u32 %s837_s27, 4  ;;  %s869_s4 = int_to_ptr.vmem [resolvable:$true] %s402_s4 }
 0x116   : > { %s866_s3 = scalar_lea.hbm %s918_s1, %s501_s29  ;;  %s388_s5 = scalar_lea.sflag [#allocation5], %s827_s24 }
 0x117   : > { %s613_s12 = scalar_lea.vmem %s869_s4, 128  ;;  %p927_p11 = scmp.ne.s32.totalorder %s922_s19, 0 }
 0x118   : > { %p614_p8 = scmp.ne.s32.totalorder %s869_s4, %s613_s12  ;;  %s705_s9 = smov [#allocation6]  }
 0x119   : > { %s617_s13 = sshll.u32 %s705_s9, 4  ;;  %s618_s13 = int_to_ptr.vmem [resolvable:$false] %s617_s13 }
 0x11a   : > { %p615_p0 = pnand %p614_p8, %p927_p11  ;;  %s619_s15 = scalar_lea.vmem %s618_s13, 256 }
 0x11b   : > { %v382_v43 = vld [vmem:[#allocation2] sm:$0xff]  ;;  %p620_p13 = scmp.lt.s32.totalorder %s869_s4, %s618_s13  ;;  %p621_p3 = scmp.lt.s32.totalorder %s619_s15, %s613_s12 }
 0x11c   : > { %v384_v44 = vadd.f32 %v383_v8, %v382_v43  ;;  %p616_p7 = pneg %p615_p0 }
 0x11d   : > { %p622_p6 = por %p621_p3, %p620_p13 }
 0x11e   : > { %386 = vst.msk [vmem:[%s837_s27] sm:$0xff] %vm385_vm2, %v384_v44 }
 0x11f   : > { %p623_p4 = pnand %p622_p6, %p616_p7 }
 0x121   : > { %626 = shalt.err (!%p623_p4)
}
 0x122   : > { %s627_s16 = scalar_lea.hbm %s866_s3, 128  ;;  %s631_s23 = scalar_lea.hbm %s918_s1, 256 }
 0x123   : > { %p628_p10 = scmp.ne.s32.totalorder %s866_s3, %s627_s16  ;;  %p632_p2 = scmp.lt.u32.totalorder %s866_s3, %s918_s1 }
 0x124   : > { %p633_p5 = scmp.lt.u32.totalorder %s631_s23, %s627_s16  ;;  %p635_p8 = scmp.lt.u32.totalorder %s627_s16, %s866_s3 }
 0x125   : > { %p629_p12 = pnand %p628_p10, %p927_p11 }
 0x126   : > { %p634_p9 = por %p633_p5, %p632_p2 }
 0x127   : > { %p630_p1 = pneg %p629_p12 }
 0x128   : > { %p636_p0 = por %p635_p8, %p634_p9 }
 0x12a   : > { %p637_p7 = pnand %p636_p0, %p630_p1 }
 0x12c   : > { %640 = shalt.err (!%p637_p7)
}
 0x12d   : > { %510 = dma.vmem_to_hbm [thread:$0]  (%p927_p11), %s869_s4, 128, %s866_s3, %s388_s5  }
 0x12e PF: > { %s414_s26 = sand.u32 1, %s675_s6   ;;  %p928_p13 = scmp.ne.s32.totalorder %s923_s21, 0 }
 0x12f   : > { %p929_p3 = scmp.ge.s32.totalorder %s695_s11, 2  ;;  %s415_s28 = scalar_lea.sflag [#allocation5], %s414_s26 }
 0x131   : > { %p517_p6 = pnand %p929_p3, %p928_p13 }
 0x133   : > { %670 = dma.done.wait (!%p517_p6), %s415_s28, 128  }
 0x134   : > { %672 = vsyncadd (!%p517_p6), %s415_s28, 4294967168  ;;  %s17_s11 = sadd.s32 1, %s695_s11   ;;  %s930_s6 = smov %s679_s7 }
 0x135   : > { %p14_p4 = scmp.ge.s32.totalorder %s17_s11, 4   ;;  %s931_s7 = smov %s683_s8 }
 0x136   : > { %s932_s8 = smov %s772_s20  ;;  %s933_s9 = smov %s691_s10 }
 0x137   : > { %s934_s10 = smov %s936_s14  ;;  %16 = sbr.rel (!%p14_p4) target bundleno = 6 (0x6), region = 73 }
 0x13e   :  { %420 = vsyncpa [#allocation4], 1 }
 0x13f   :  { %422 = vsyncpa [#allocation4 + $0x1], 1 }
 0x140   :  { %423 = vsyncpa [#allocation5], 1 }
 0x141   :  { %425 = vsyncpa [#allocation5 + $0x1], 1 }

</bundles_post_ra>
